<compile_context>
chip_gen: v6e
topology: v6e:2x2x1
jax: 0.10.0
libtpu: 0.0.40
codegen_flags: <defaults>
</compile_context>

<pallas_src>
import functools
import math

import jax
import jax.numpy as jnp
from jax import lax
from jax.experimental import pallas as pl
from jax.experimental.pallas import tpu as pltpu


# ----------------------------------------------------------------------------
# Small helpers
# ----------------------------------------------------------------------------
def _pick_tile(dim, preferred):
    """Use `preferred` when it divides `dim`, otherwise fall back to full dim
    (keeps the (8,128) block constraints satisfied for small test shapes)."""
    if dim <= preferred:
        return dim
    return preferred if dim % preferred == 0 else dim


def _rotate_half_slab(t, heads, head_dim):
    """Per-head half-rotation on a (rows, heads*head_dim) slab:
    within each head's Dh columns, output = [x[Dh/2:], x[:Dh/2]].
    Pure lane slicing + one concatenate (no MXU work, no reshape)."""
    half = head_dim // 2
    parts = []
    for h in range(heads):
        base = h * head_dim
        parts.append(t[:, base + half: base + head_dim])
        parts.append(t[:, base: base + half])
    return jnp.concatenate(parts, axis=-1)


# ----------------------------------------------------------------------------
# Kernels
# ----------------------------------------------------------------------------
def _qkv_rope_kernel(x_ref, w_ref, cos_ref, sin_ref, q_ref, k_ref, v_ref, *,
                     heads, head_dim):
    """Fused QKV projection + RoPE for one (batch, L-tile).

    x_ref   : (tl, E)     input tokens
    w_ref   : (E, 3E)     pre-transposed stacked [Wq*1/sqrt(Dh) | Wk | Wv]
    cos/sin : (tl, E)     half-layout RoPE tables tiled across heads
                          (sin already carries the rotate-half sign)
    outputs : q/k/v each (tl, E), token-major
    """
    E = heads * head_dim
    x = x_ref[...]
    qkv = jnp.dot(x, w_ref[...], preferred_element_type=jnp.float32)   # (tl, 3E)
    q = qkv[:, :E]
    k = qkv[:, E:2 * E]
    v = qkv[:, 2 * E:]

    cos = cos_ref[...]
    sin = sin_ref[...]
    q_ref[...] = q * cos + _rotate_half_slab(q, heads, head_dim) * sin
    k_ref[...] = k * cos + _rotate_half_slab(k, heads, head_dim) * sin
    v_ref[...] = v


def _flash_attn_kernel(q_ref, k_ref, v_ref, bias_ref, o_ref,
                       m_ref, l_ref, acc_ref, *, heads, head_dim):
    """Flash-style attention for one (batch, q-tile, kv-tile) step.

    q_ref    : (tq, E)   rotated, pre-scaled queries (all heads)
    k_ref    : (tkv, E)  rotated keys
    v_ref    : (tkv, E)  values
    bias_ref : (tq, tkv) additive mask bias (0 or -1e20)
    o_ref    : (tq, E)   output, token-major (written on last kv step)
    m/l/acc  : per-head online-softmax state (heads, tq, 1/1/Dh)
    """
    kv_i = pl.program_id(2)

    @pl.when(kv_i == 0)
    def _():
        m_ref[...] = jnp.full(m_ref.shape, -jnp.inf, jnp.float32)
        l_ref[...] = jnp.zeros(l_ref.shape, jnp.float32)
        acc_ref[...] = jnp.zeros(acc_ref.shape, jnp.float32)

    q_all = q_ref[...]
    k_all = k_ref[...]
    v_all = v_ref[...]
    bias = bias_ref[...]

    for h in range(heads):
        sl = slice(h * head_dim, (h + 1) * head_dim)
        q = q_all[:, sl]                                   # (tq, Dh)
        k = k_all[:, sl]                                   # (tkv, Dh)
        v = v_all[:, sl]                                   # (tkv, Dh)

        # Contract last dims directly (no in-kernel transpose of k).
        s = lax.dot_general(q, k, (((1,), (1,)), ((), ())),
                            preferred_element_type=jnp.float32)  # (tq, tkv)
        s = s + bias

        m_prev = m_ref[h]                                  # (tq, 1)
        m_new = jnp.maximum(m_prev, jnp.max(s, axis=-1, keepdims=True))
        alpha = jnp.exp(m_prev - m_new)
        p = jnp.exp(s - m_new)                             # (tq, tkv)

        l_ref[h] = alpha * l_ref[h] + jnp.sum(p, axis=-1, keepdims=True)
        acc_ref[h] = alpha * acc_ref[h] + jnp.dot(
            p, v, preferred_element_type=jnp.float32)
        m_ref[h] = m_new

    @pl.when(kv_i == pl.num_programs(2) - 1)
    def _():
        outs = [acc_ref[h] * pl.reciprocal(l_ref[h]) for h in range(heads)]
        o_ref[...] = jnp.concatenate(outs, axis=-1).astype(o_ref.dtype)


def _fc_kernel(a_ref, w_ref, b_ref, o_ref, acc_ref):
    """Tiled (M,K)@(K,N) + bias with k-loop accumulation."""
    @pl.when(pl.program_id(2) == 0)
    def _():
        acc_ref[...] = jnp.zeros(acc_ref.shape, jnp.float32)

    acc_ref[...] += jnp.dot(a_ref[...], w_ref[...],
                            preferred_element_type=jnp.float32)

    @pl.when(pl.program_id(2) == pl.num_programs(2) - 1)
    def _():
        o_ref[...] = (acc_ref[...] + b_ref[...]).astype(o_ref.dtype)


# ----------------------------------------------------------------------------
# RoPE tables
# ----------------------------------------------------------------------------
def _rope_tables_half(seq_len, head_dim):
    """Half-rotation layout (even-then-odd permuted basis), sign folded into sin."""
    pos = jnp.arange(seq_len, dtype=jnp.float32)[:, None]          # (L, 1)
    ids = jnp.arange(head_dim // 2, dtype=jnp.float32)             # (Dh/2,)
    theta = jnp.power(10000.0, -2.0 * ids / head_dim)
    freqs = pos * theta                                            # (L, Dh/2)
    cos_h = jnp.cos(freqs)
    sin_h = jnp.sin(freqs)
    cos_p = jnp.concatenate([cos_h, cos_h], axis=-1)               # (L, Dh)
    sin_p = jnp.concatenate([-sin_h, sin_h], axis=-1)              # signed
    return cos_p, sin_p


def _rope_tables_interleaved(seq_len, head_dim):
    """Original interleaved layout (used only by the pure-JAX reference)."""
    pos = jnp.arange(seq_len, dtype=jnp.float32)[:, None]
    ids = jnp.arange(head_dim // 2, dtype=jnp.float32)
    theta = jnp.power(10000.0, -2.0 * ids / head_dim)
    freqs = pos * theta
    cos_pos = jnp.repeat(jnp.cos(freqs), 2, axis=-1)
    sin_pos = jnp.repeat(jnp.sin(freqs), 2, axis=-1)
    return cos_pos, sin_pos


# ----------------------------------------------------------------------------
# Wrapper
# ----------------------------------------------------------------------------
def multihead_attention_forward(x, mask, params, heads):
    """x: (B, L, E) f32, mask: (L, L) int (1 => masked). Returns (B, L, E)."""
    B, L, E = x.shape
    Dh = E // heads
    assert Dh * heads == E
    f32 = jnp.float32

    # ---- host-side prep (free wrapper work, no per-step kernel cost) --------
    # Even-then-odd output-feature permutation per head: turns the interleaved
    # RoPE into a half-rotation.  q and k are permuted identically, so QK^T is
    # unchanged; v / Wo stay in the original order.
    within = jnp.concatenate([jnp.arange(0, Dh, 2), jnp.arange(1, Dh, 2)])
    row_perm = (jnp.arange(heads)[:, None] * Dh + within[None, :]).reshape(-1)

    inv_scale = 1.0 / math.sqrt(Dh)
    wq_t = (params["wq"][row_perm, :] * inv_scale).T          # scale folded in
    wk_t = params["wk"][row_perm, :].T
    wv_t = params["wv"].T
    w_fused = jnp.concatenate([wq_t, wk_t, wv_t], axis=1).astype(f32)  # (E, 3E)

    cos_h, sin_h = _rope_tables_half(L, Dh)                   # (L, Dh)
    cos_full = jnp.tile(cos_h, (1, heads)).astype(f32)        # (L, E)
    sin_full = jnp.tile(sin_h, (1, heads)).astype(f32)

    # Additive mask bias (replaces int mask + compare/select in-kernel).
    bias = jnp.where(mask == 1, f32(-1e20), f32(0.0)).astype(f32)      # (L, L)

    # ---- kernel 1: fused QKV projection + RoPE ------------------------------
    tl = _pick_tile(L, 256)
    qkv_fn = pl.pallas_call(
        functools.partial(_qkv_rope_kernel, heads=heads, head_dim=Dh),
        out_shape=(jax.ShapeDtypeStruct((B, L, E), f32),
                   jax.ShapeDtypeStruct((B, L, E), f32),
                   jax.ShapeDtypeStruct((B, L, E), f32)),
        grid=(B, L // tl),
        in_specs=[
            pl.BlockSpec((None, tl, E), lambda b, li: (b, li, 0)),   # x
            pl.BlockSpec((E, 3 * E), lambda b, li: (0, 0)),          # fused W
            pl.BlockSpec((tl, E), lambda b, li: (li, 0)),            # cos
            pl.BlockSpec((tl, E), lambda b, li: (li, 0)),            # sin (signed)
        ],
        out_specs=[
            pl.BlockSpec((None, tl, E), lambda b, li: (b, li, 0)),
            pl.BlockSpec((None, tl, E), lambda b, li: (b, li, 0)),
            pl.BlockSpec((None, tl, E), lambda b, li: (b, li, 0)),
        ],
        compiler_params=pltpu.CompilerParams(
            dimension_semantics=("parallel", "parallel")),
    )
    q, k, v = qkv_fn(x.astype(f32), w_fused, cos_full, sin_full)

    # ---- kernel 2: flash-style attention, token-major output ----------------
    tq = _pick_tile(L, 128)
    tkv = _pick_tile(L, 128)
    attn_fn = pl.pallas_call(
        functools.partial(_flash_attn_kernel, heads=heads, head_dim=Dh),
        out_shape=jax.ShapeDtypeStruct((B, L, E), f32),
        grid=(B, L // tq, L // tkv),
        in_specs=[
            pl.BlockSpec((None, tq, E), lambda b, qi, ki: (b, qi, 0)),   # q
            pl.BlockSpec((None, tkv, E), lambda b, qi, ki: (b, ki, 0)),  # k
            pl.BlockSpec((None, tkv, E), lambda b, qi, ki: (b, ki, 0)),  # v
            pl.BlockSpec((tq, tkv), lambda b, qi, ki: (qi, ki)),         # bias
        ],
        out_specs=pl.BlockSpec((None, tq, E), lambda b, qi, ki: (b, qi, 0)),
        scratch_shapes=[
            pltpu.VMEM((heads, tq, 1), f32),    # running max per head
            pltpu.VMEM((heads, tq, 1), f32),    # running sum per head
            pltpu.VMEM((heads, tq, Dh), f32),   # output accumulator per head
        ],
        compiler_params=pltpu.CompilerParams(
            dimension_semantics=("parallel", "parallel", "arbitrary")),
    )
    attn_out = attn_fn(q, k, v, bias)                     # (B, L, E), token-major

    # ---- kernel 3: tiled fc_out matmul + bias --------------------------------
    M, K, N = B * L, E, E
    tm = _pick_tile(M, 256)
    tn = _pick_tile(N, 256)
    tk = _pick_tile(K, 512)
    fc_fn = pl.pallas_call(
        _fc_kernel,
        out_shape=jax.ShapeDtypeStruct((M, N), f32),
        grid=(M // tm, N // tn, K // tk),
        in_specs=[
            pl.BlockSpec((tm, tk), lambda i, j, kk: (i, kk)),
            pl.BlockSpec((tk, tn), lambda i, j, kk: (kk, j)),
            pl.BlockSpec((1, tn), lambda i, j, kk: (0, j)),
        ],
        out_specs=pl.BlockSpec((tm, tn), lambda i, j, kk: (i, j)),
        scratch_shapes=[pltpu.VMEM((tm, tn), f32)],
        compiler_params=pltpu.CompilerParams(
            dimension_semantics=("parallel", "parallel", "arbitrary")),
    )
    out = fc_fn(attn_out.reshape(M, K),
                params["wo"].T.astype(f32),
                params["bo"].reshape(1, N).astype(f32))
    return out.reshape(B, L, E)


# ----------------------------------------------------------------------------
# Pure-JAX reference (mirrors the PyTorch forward exactly)
# ----------------------------------------------------------------------------
def reference_forward(x, mask, params, heads):
    B, L, E = x.shape
    Dh = E // heads

    def proj(w):
        return (x @ w.T).reshape(B, L, heads, Dh).transpose(0, 2, 1, 3)

    q, k, v = proj(params["wq"]), proj(params["wk"]), proj(params["wv"])

    cos_pos, sin_pos = _rope_tables_interleaved(L, Dh)

    def rope(t):
        t2 = jnp.stack([-t[..., 1::2], t[..., ::2]], axis=-1).reshape(t.shape)
        return t * cos_pos + t2 * sin_pos

    q, k = rope(q), rope(k)
    energy = jnp.einsum("bhqd,bhkd->bhqk", q, k)
    energy = jnp.where(mask == 1, jnp.float32(-1e20), energy)
    attn = jax.nn.softmax(energy / math.sqrt(Dh), axis=-1)
    out = jnp.einsum("bhqk,bhkd->bhqd", attn, v)
    out = out.transpose(0, 2, 1, 3).reshape(B, L, E)
    return out @ params["wo"].T + params["bo"]


# ----------------------------------------------------------------------------
# Main
# ----------------------------------------------------------------------------
if __name__ == "__main__":
    B, L, E, H = 2, 8, 32, 4          # head_dim = 8

    key = jax.random.PRNGKey(0)
    kx, kq, kk, kv, ko, kb = jax.random.split(key, 6)
    x = jax.random.normal(kx, (B, L, E), dtype=jnp.float32)
    params = {
        "wq": 0.1 * jax.random.normal(kq, (E, E), dtype=jnp.float32),
        "wk": 0.1 * jax.random.normal(kk, (E, E), dtype=jnp.float32),
        "wv": 0.1 * jax.random.normal(kv, (E, E), dtype=jnp.float32),
        "wo": 0.1 * jax.random.normal(ko, (E, E), dtype=jnp.float32),
        "bo": 0.1 * jax.random.normal(kb, (E,), dtype=jnp.float32),
    }
    # causal mask: 1 above the diagonal => masked (matches masked_fill(mask==1, -1e20))
    mask = jnp.triu(jnp.ones((L, L), dtype=jnp.int32), k=1)

    out = multihead_attention_forward(x, mask, params, H)
    out = jax.block_until_ready(out)

    ref = reference_forward(x, mask, params, H)
    assert out.shape == (B, L, E)
    assert jnp.allclose(out, ref, rtol=1e-4, atol=1e-4), "mismatch vs reference"

    print("KERNEL_OK")
</pallas_src>

<mosaic_0001>
module attributes {stable_mosaic.version = 11 : i64} {
  func.func @_qkv_rope_kernel(%arg0: i32, %arg1: i32, %arg2: memref<1x8x32xf32, #tpu.memory_space<vmem>>, %arg3: memref<32x96xf32, #tpu.memory_space<vmem>>, %arg4: memref<8x32xf32, #tpu.memory_space<vmem>>, %arg5: memref<8x32xf32, #tpu.memory_space<vmem>>, %arg6: memref<1x8x32xf32, #tpu.memory_space<vmem>>, %arg7: memref<1x8x32xf32, #tpu.memory_space<vmem>>, %arg8: memref<1x8x32xf32, #tpu.memory_space<vmem>>) attributes {dimension_semantics = [#tpu.dimension_semantics<parallel>, #tpu.dimension_semantics<parallel>], iteration_bounds = array<i64: 2, 1>, scalar_prefetch = 0 : i64, scratch_operands = 0 : i64, tpu.core_type = #tpu.core_type<tc>, window_params = [{transform_indices = @transform_0, window_bounds = array<i64: 1, 8, 32>}, {pipeline_mode = #tpu.pipeline_mode<synchronous>, transform_indices = @transform_1, window_bounds = array<i64: 32, 96>}, {transform_indices = @transform_2, window_bounds = array<i64: 8, 32>}, {transform_indices = @transform_3, window_bounds = array<i64: 8, 32>}, {transform_indices = @transform_4, window_bounds = array<i64: 1, 8, 32>}, {transform_indices = @transform_5, window_bounds = array<i64: 1, 8, 32>}, {transform_indices = @transform_6, window_bounds = array<i64: 1, 8, 32>}]} {
    %c0 = arith.constant 0 : index
    %c0_0 = arith.constant 0 : index
    %c0_1 = arith.constant 0 : index
    %0 = vector.load %arg2[%c0, %c0_0, %c0_1] : memref<1x8x32xf32, #tpu.memory_space<vmem>>, vector<1x8x32xf32>
    %1 = vector.shape_cast %0 : vector<1x8x32xf32> to vector<8x32xf32>
    %c0_2 = arith.constant 0 : index
    %c0_3 = arith.constant 0 : index
    %2 = vector.load %arg3[%c0_2, %c0_3] : memref<32x96xf32, #tpu.memory_space<vmem>>, vector<32x96xf32>
    %cst = arith.constant dense<0.000000e+00> : vector<8x96xf32>
    %3 = tpu.matmul %1, %2, %cst {dimension_numbers = #tpu.dot_dimension_numbers<[1], [0], [0], [1], [0, 0, 1, 1], [], []>} : vector<8x32xf32>, vector<32x96xf32>, vector<8x96xf32> -> vector<8x96xf32>
    %4 = vector.extract_strided_slice %3 {offsets = [0, 0], sizes = [8, 32], strides = [1, 1]} : vector<8x96xf32> to vector<8x32xf32>
    %5 = vector.extract_strided_slice %3 {offsets = [0, 32], sizes = [8, 32], strides = [1, 1]} : vector<8x96xf32> to vector<8x32xf32>
    %6 = vector.extract_strided_slice %3 {offsets = [0, 64], sizes = [8, 32], strides = [1, 1]} : vector<8x96xf32> to vector<8x32xf32>
    %c0_4 = arith.constant 0 : index
    %c0_5 = arith.constant 0 : index
    %7 = vector.load %arg4[%c0_4, %c0_5] : memref<8x32xf32, #tpu.memory_space<vmem>>, vector<8x32xf32>
    %c0_6 = arith.constant 0 : index
    %c0_7 = arith.constant 0 : index
    %8 = vector.load %arg5[%c0_6, %c0_7] : memref<8x32xf32, #tpu.memory_space<vmem>>, vector<8x32xf32>
    %9 = arith.mulf %4, %7 : vector<8x32xf32>
    %10 = vector.extract_strided_slice %4 {offsets = [0, 4], sizes = [8, 4], strides = [1, 1]} : vector<8x32xf32> to vector<8x4xf32>
    %11 = vector.extract_strided_slice %4 {offsets = [0, 0], sizes = [8, 4], strides = [1, 1]} : vector<8x32xf32> to vector<8x4xf32>
    %12 = vector.extract_strided_slice %4 {offsets = [0, 12], sizes = [8, 4], strides = [1, 1]} : vector<8x32xf32> to vector<8x4xf32>
    %13 = vector.extract_strided_slice %4 {offsets = [0, 8], sizes = [8, 4], strides = [1, 1]} : vector<8x32xf32> to vector<8x4xf32>
    %14 = vector.extract_strided_slice %4 {offsets = [0, 20], sizes = [8, 4], strides = [1, 1]} : vector<8x32xf32> to vector<8x4xf32>
    %15 = vector.extract_strided_slice %4 {offsets = [0, 16], sizes = [8, 4], strides = [1, 1]} : vector<8x32xf32> to vector<8x4xf32>
    %16 = vector.extract_strided_slice %4 {offsets = [0, 28], sizes = [8, 4], strides = [1, 1]} : vector<8x32xf32> to vector<8x4xf32>
    %17 = vector.extract_strided_slice %4 {offsets = [0, 24], sizes = [8, 4], strides = [1, 1]} : vector<8x32xf32> to vector<8x4xf32>
    %18 = tpu.concatenate %10, %11, %12, %13, %14, %15, %16, %17 in 1 : vector<8x4xf32>, vector<8x4xf32>, vector<8x4xf32>, vector<8x4xf32>, vector<8x4xf32>, vector<8x4xf32>, vector<8x4xf32>, vector<8x4xf32> -> vector<8x32xf32>
    %19 = arith.mulf %18, %8 : vector<8x32xf32>
    %20 = arith.addf %9, %19 : vector<8x32xf32>
    %c0_8 = arith.constant 0 : index
    %c0_9 = arith.constant 0 : index
    %c0_10 = arith.constant 0 : index
    %21 = vector.load %arg6[%c0_8, %c0_9, %c0_10] : memref<1x8x32xf32, #tpu.memory_space<vmem>>, vector<1x8x32xf32>
    %22 = vector.shape_cast %21 : vector<1x8x32xf32> to vector<8x32xf32>
    %23 = vector.shape_cast %20 : vector<8x32xf32> to vector<1x8x32xf32>
    tpu.vector_store %arg6[%c0_8, %c0_9, %c0_10], %23 {strides = array<i32>} : memref<1x8x32xf32, #tpu.memory_space<vmem>>, vector<1x8x32xf32>,
    %24 = arith.mulf %5, %7 : vector<8x32xf32>
    %25 = vector.extract_strided_slice %5 {offsets = [0, 4], sizes = [8, 4], strides = [1, 1]} : vector<8x32xf32> to vector<8x4xf32>
    %26 = vector.extract_strided_slice %5 {offsets = [0, 0], sizes = [8, 4], strides = [1, 1]} : vector<8x32xf32> to vector<8x4xf32>
    %27 = vector.extract_strided_slice %5 {offsets = [0, 12], sizes = [8, 4], strides = [1, 1]} : vector<8x32xf32> to vector<8x4xf32>
    %28 = vector.extract_strided_slice %5 {offsets = [0, 8], sizes = [8, 4], strides = [1, 1]} : vector<8x32xf32> to vector<8x4xf32>
    %29 = vector.extract_strided_slice %5 {offsets = [0, 20], sizes = [8, 4], strides = [1, 1]} : vector<8x32xf32> to vector<8x4xf32>
    %30 = vector.extract_strided_slice %5 {offsets = [0, 16], sizes = [8, 4], strides = [1, 1]} : vector<8x32xf32> to vector<8x4xf32>
    %31 = vector.extract_strided_slice %5 {offsets = [0, 28], sizes = [8, 4], strides = [1, 1]} : vector<8x32xf32> to vector<8x4xf32>
    %32 = vector.extract_strided_slice %5 {offsets = [0, 24], sizes = [8, 4], strides = [1, 1]} : vector<8x32xf32> to vector<8x4xf32>
    %33 = tpu.concatenate %25, %26, %27, %28, %29, %30, %31, %32 in 1 : vector<8x4xf32>, vector<8x4xf32>, vector<8x4xf32>, vector<8x4xf32>, vector<8x4xf32>, vector<8x4xf32>, vector<8x4xf32>, vector<8x4xf32> -> vector<8x32xf32>
    %34 = arith.mulf %33, %8 : vector<8x32xf32>
    %35 = arith.addf %24, %34 : vector<8x32xf32>
    %c0_11 = arith.constant 0 : index
    %c0_12 = arith.constant 0 : index
    %c0_13 = arith.constant 0 : index
    %36 = vector.load %arg7[%c0_11, %c0_12, %c0_13] : memref<1x8x32xf32, #tpu.memory_space<vmem>>, vector<1x8x32xf32>
    %37 = vector.shape_cast %36 : vector<1x8x32xf32> to vector<8x32xf32>
    %38 = vector.shape_cast %35 : vector<8x32xf32> to vector<1x8x32xf32>
    tpu.vector_store %arg7[%c0_11, %c0_12, %c0_13], %38 {strides = array<i32>} : memref<1x8x32xf32, #tpu.memory_space<vmem>>, vector<1x8x32xf32>,
    %c0_14 = arith.constant 0 : index
    %c0_15 = arith.constant 0 : index
    %c0_16 = arith.constant 0 : index
    %39 = vector.load %arg8[%c0_14, %c0_15, %c0_16] : memref<1x8x32xf32, #tpu.memory_space<vmem>>, vector<1x8x32xf32>
    %40 = vector.shape_cast %39 : vector<1x8x32xf32> to vector<8x32xf32>
    %41 = vector.shape_cast %6 : vector<8x32xf32> to vector<1x8x32xf32>
    tpu.vector_store %arg8[%c0_14, %c0_15, %c0_16], %41 {strides = array<i32>} : memref<1x8x32xf32, #tpu.memory_space<vmem>>, vector<1x8x32xf32>,
    return
  }
  func.func @transform_0(%arg0: i32, %arg1: i32) -> (i32, i32, i32) {
    %c0_i32 = arith.constant 0 : i32
    %c0_i32_0 = arith.constant 0 : i32
    return %arg0, %arg1, %c0_i32 : i32, i32, i32
  }
  func.func @transform_1(%arg0: i32, %arg1: i32) -> (i32, i32) {
    %c0_i32 = arith.constant 0 : i32
    %c0_i32_0 = arith.constant 0 : i32
    %c0_i32_1 = arith.constant 0 : i32
    return %c0_i32, %c0_i32_0 : i32, i32
  }
  func.func @transform_2(%arg0: i32, %arg1: i32) -> (i32, i32) {
    %c0_i32 = arith.constant 0 : i32
    %c0_i32_0 = arith.constant 0 : i32
    return %arg1, %c0_i32 : i32, i32
  }
  func.func @transform_3(%arg0: i32, %arg1: i32) -> (i32, i32) {
    %c0_i32 = arith.constant 0 : i32
    %c0_i32_0 = arith.constant 0 : i32
    return %arg1, %c0_i32 : i32, i32
  }
  func.func @transform_4(%arg0: i32, %arg1: i32) -> (i32, i32, i32) {
    %c0_i32 = arith.constant 0 : i32
    %c0_i32_0 = arith.constant 0 : i32
    return %arg0, %arg1, %c0_i32 : i32, i32, i32
  }
  func.func @transform_5(%arg0: i32, %arg1: i32) -> (i32, i32, i32) {
    %c0_i32 = arith.constant 0 : i32
    %c0_i32_0 = arith.constant 0 : i32
    return %arg0, %arg1, %c0_i32 : i32, i32, i32
  }
  func.func @transform_6(%arg0: i32, %arg1: i32) -> (i32, i32, i32) {
    %c0_i32 = arith.constant 0 : i32
    %c0_i32_0 = arith.constant 0 : i32
    return %arg0, %arg1, %c0_i32 : i32, i32, i32
  }
}

</mosaic_0001>

<bundles_post_ra>
// kernel: tpu_custom_call.1
= control target key start
LH: loop header
LB: loop body
LE: loop exit
PB: predicated region body
PF: predicated region fallthrough
CT: control target
= control target key end

     0   :  { %s1473_s0 = inlined_call_operand.hbm [shape: f32[2,8,32], index: 0, kind: input, shape index: {}]   ;;  %s1474_s1 = inlined_call_operand.hbm [shape: f32[32,96], index: 1, kind: input, shape index: {}]   ;;  %s1475_s2 = inlined_call_operand.hbm [shape: f32[8,32], index: 2, kind: input, shape index: {}]   ;;  %s1476_s3 = inlined_call_operand.hbm [shape: f32[8,32], index: 3, kind: input, shape index: {}]   ;;  %s1477_s4 = inlined_call_operand.hbm [shape: f32[2,8,32], index: 4, kind: output, shape index: {0}]   ;;  %s1478_s5 = inlined_call_operand.hbm [shape: f32[2,8,32], index: 5, kind: output, shape index: {1}]   ;;  %s1479_s6 = inlined_call_operand.hbm [shape: f32[2,8,32], index: 6, kind: output, shape index: {2}]  }
   0x1   :  { %1483 = sst [smem:[#allocation19_spill]] %s1474_s1 }
   0x2   :  { %1484 = sst [smem:[#allocation20_spill]] %s1475_s2 }
   0x3   :  { %12 = vsyncpa [#allocation3], 0 }
   0x4   :  { %14 = vsyncpa [#allocation3 + $0x1], 0 }
   0x5   :  { %15 = vsyncpa [#allocation6], 0 }
   0x6   :  { %16 = vsyncpa [#allocation9], 0 }
   0x7   :  { %17 = vsyncpa [#allocation4], 0 }
   0x8   :  { %19 = vsyncpa [#allocation4 + $0x1], 0 }
   0x9   :  { %20 = vsyncpa [#allocation12], 0 }
   0xa   :  { %22 = vsyncpa [#allocation12 + $0x1], 0  ;;  %s1189_s21 = smov 0   ;;  %s1191_s22 = smov 0  }
   0xb   :  { %s1193_s23 = smov 0   ;;  %s1195_s24 = smov 0  }
   0xc   :  { %s1197_s25 = smov 0   ;;  %s1199_s26 = smov 0  }
   0xd LB: > { %s1220_s27 = sadd.s32 4294967295, %s1134_s26   ;;  %s1482_s28 = sadd.s32 4294967294, %s1134_s26   ;;  %s1134_s26 = sphi %s1199_s26, %s28_s26   ;;  %s1130_s25 = sphi %s1197_s25, %s1506_s25   ;;  %s1126_s24 = sphi %s1195_s24, %s1505_s24   ;;  %s1122_s23 = sphi %s1193_s23, %s1504_s23   ;;  %s1118_s22 = sphi %s1191_s22, %s1503_s22   ;;  %s1114_s21 = sphi %s1189_s21, %s1502_s21  }
   0xe   : > { %p62_p0 = scmp.ne.s32.totalorder %s1118_s22, %s1114_s21  ;;  %p1480_p1 = scmp.eq.s32.totalorder %s1220_s27, 0 }
   0xf   : > { %p167_p3 = scmp.eq.s32.totalorder %s1482_s28, 1  ;;  %p730_p5 = scmp.ge.s32.totalorder %s1134_s26, 1 }
  0x10   : > { %p1231_p4 = por %p1480_p1, %p62_p0  ;;  %p230_p7 = scmp.lt.s32.totalorder %s1134_s26, 3 }
  0x11   : > { %p1236_p6 = por %p167_p3, %p62_p0  ;;  %s1136_s8 = smov [#allocation5]  }
  0x12   : > { %s1485_s29 = scalar_select %p1231_p4, 1, 0 }
  0x13   : > { %s1486_s30 = scalar_select %p1236_p6, 1, 0 }
  0x14   : > { %p1241_p8 = pnand %p730_p5, %p230_p7  ;;  %s242_s9 = sshll.u32 %s1136_s8, 4  ;;  %s243_s9 = int_to_ptr.vmem [resolvable:$true] %s242_s9 }
  0x15   : > { %s1137_s11 = smov [#allocation7]   ;;  %s1138_s13 = smov [#allocation8]  }
  0x16   : > { %p790_p9 = pneg %p1241_p8  ;;  %s258_s12 = sshll.u32 %s1137_s11, 4  ;;  %s259_s12 = int_to_ptr.vmem [resolvable:$true] %s258_s12 }
  0x17   : > { %s271_s14 = sshll.u32 %s1138_s13, 4  ;;  %s895_s15 = scalar_lea.vmem %s243_s9, 512  ;;  %s272_s14 = int_to_ptr.vmem [resolvable:$true] %s271_s14 }
  0x18   : > { %p1250_p11 = pnand %p790_p9, %p1480_p1  ;;  %p896_p13 = scmp.ne.s32.totalorder %s243_s9, %s895_s15 }
  0x19   : > { %p903_p5 = scmp.lt.s32.totalorder %s243_s9, %s243_s9  ;;  %p904_p7 = scmp.lt.s32.totalorder %s895_s15, %s895_s15 }
  0x1a   : > { %p886_p12 = pneg %p1250_p11 }
  0x1b   : > { %p905_p9 = por %p904_p7, %p903_p5 }
  0x1c   : > { %p898_p0 = pnand %p896_p13, %p886_p12 }
  0x1e   : > { %p899_p3 = pneg %p898_p0 }
  0x20   : > { %p906_p10 = pnand %p905_p9, %p899_p3 }
  0x22   : > { %909 = shalt.err (!%p906_p10)
}
  0x23   : > { %s1139_s16 = smov 128   ;;  %s1140_s17 = smov 8  }
  0x24   : > { %s1489_s1 = sld [smem:[#allocation19_spill]]  ;;  %s921_s20 = scalar_lea.vmem %s259_s12, 128 }
  0x25   : > { %p922_p1 = scmp.ne.s32.totalorder %s259_s12, %s921_s20  ;;  %p929_p2 = scmp.lt.s32.totalorder %s259_s12, %s259_s12 }
  0x26   : > { %p930_p6 = scmp.lt.s32.totalorder %s921_s20, %s921_s20 }
  0x27   : > { %p924_p13 = pnand %p922_p1, %p886_p12 }
  0x28   : > { %p931_p5 = por %p930_p6, %p929_p2 }
  0x29   : > { %p925_p0 = pneg %p924_p13 }
  0x2a   : > { %793 = dma.hbm_to_vmem [thread:$0]  (!%p1250_p11), %s1489_s1, 512, %s243_s9, [#allocation6], %s1139_s16, %s1139_s16, %s1140_s17  }
  0x2b   : > { %p932_p3 = pnand %p931_p5, %p925_p0 }
  0x2d   : > { %935 = shalt.err (!%p932_p3)
}
  0x2e   : > { %s1490_s2 = sld [smem:[#allocation20_spill]]  ;;  %s947_s9 = scalar_lea.vmem %s272_s14, 128 }
  0x2f   : > { %p948_p10 = scmp.ne.s32.totalorder %s272_s14, %s947_s9  ;;  %p955_p9 = scmp.lt.s32.totalorder %s272_s14, %s272_s14 }
  0x30   : > { %p956_p13 = scmp.lt.s32.totalorder %s947_s9, %s947_s9 }
  0x31   : > { %p950_p7 = pnand %p948_p10, %p886_p12 }
  0x32   : > { %p957_p4 = por %p956_p13, %p955_p9 }
  0x33   : > { %p951_p1 = pneg %p950_p7 }
  0x34   : > { %796 = dma.hbm_to_vmem [thread:$0]  (!%p1250_p11), %s1490_s2, 128, %s259_s12, [#allocation6]  }
  0x35   : > { %p958_p2 = pnand %p957_p4, %p951_p1 }
  0x37   : > { %961 = shalt.err (!%p958_p2)
}
  0x38   : > { %799 = dma.hbm_to_vmem [thread:$0]  (!%p1250_p11), %s1476_s3, 128, %s272_s14, [#allocation9]  }
  0x39   : > { %s49_s12 = sadd.s32 1, %s1122_s23  ;;  %s40_s16 = sadd.s32 1, %s1130_s25 }
  0x3a   : > { %p56_p4 = scmp.ne.s32.totalorder %s1122_s23, %s1118_s22  ;;  %p42_p6 = scmp.ge.s32.totalorder %s40_s16, 2 }
  0x3b   : > { %p57_p12 = scmp.eq.s32.totalorder %s1134_s26, 0  ;;  %p1491_p0 = scmp.eq.s32.totalorder %s1220_s27, 1 }
  0x3c   : > { %p817_p3 = scmp.lt.s32.totalorder %s1134_s26, 2  ;;  %s1508_s16 = smov (%p42_p6, %s40_s16), 0 }
  0x3d   : > { %p1287_p5 = por %p1491_p0, %p56_p4  ;;  %p58_p10 = por %p57_p12, %p56_p4 }
  0x3e   : > { %s282_s17 = sand.u32 1, %s1122_s23   ;;  %s44_s18 = ssub.s32 %s1130_s25, %s1508_s16 }
  0x3f   : > { %p47_p7 = scmp.eq.s32.totalorder %s44_s18, 0  ;;  %s735_s14 = sshll.u32 %s282_s17, 3 }
  0x40   : > { %s736_s19 = sshll.u32 %s1130_s25, 7  ;;  %s286_s13 = scalar_lea.vmem [#allocation2], %s735_s14 }
  0x41   : > { %s1299_s20 = scalar_select %p47_p7, %s1122_s23, %s49_s12  }
  0x42   : > { %s292_s9 = scalar_lea.hbm %s1473_s0, %s736_s19  ;;  %s294_s15 = sshll.u32 %s286_s13, 4  ;;  %s295_s15 = int_to_ptr.vmem [resolvable:$true] %s294_s15 }
  0x43   : > { %p1306_p11 = pnand %p817_p3, %p58_p10  ;;  %s283_s1 = scalar_lea.sflag [#allocation3], %s282_s17 }
  0x44   : > { %s975_s18 = scalar_lea.vmem %s295_s15, 128  ;;  %s1141_s12 = smov [#allocation2]  }
  0x45   : > { %p964_p1 = pneg %p1306_p11  ;;  %p976_p9 = scmp.ne.s32.totalorder %s295_s15, %s975_s18 }
  0x46   : > { %s980_s2 = sshll.u32 %s1141_s12, 4  ;;  %s981_s2 = int_to_ptr.vmem [resolvable:$false] %s980_s2 }
  0x47   : > { %p978_p13 = pnand %p976_p9, %p964_p1  ;;  %s982_s19 = scalar_lea.vmem %s981_s2, 256 }
  0x48   : > { %p983_p4 = scmp.lt.s32.totalorder %s295_s15, %s981_s2  ;;  %p984_p6 = scmp.lt.s32.totalorder %s982_s19, %s975_s18 }
  0x49   : > { %p979_p2 = pneg %p978_p13 }
  0x4a   : > { %p985_p12 = por %p984_p6, %p983_p4 }
  0x4c   : > { %p986_p0 = pnand %p985_p12, %p979_p2 }
  0x4e   : > { %989 = shalt.err (!%p986_p0)
}
  0x4f   : > { %803 = dma.hbm_to_vmem [thread:$0]  (!%p1306_p11), %s292_s9, 128, %s295_s15, %s283_s1  }
  0x50   : > { %303 = sbr.rel (%p1241_p8) target bundleno = 689 (0x2b1), region = 36  ;;  %s1317_s17 = sand.u32 (!%p1241_p8), 1, %s1118_s22  }
  0x51   : > { %s1320_s14 = sshll.u32 (!%p1241_p8), %s1317_s17, 3  ;;  %s306_s2 = scalar_lea.sflag (!%p1241_p8), [#allocation3], %s1317_s17 }
  0x52   : > { %s309_s8 = scalar_lea.vmem (!%p1241_p8), [#allocation2], %s1320_s14  ;;  %p1494_p3 = scmp.ne.s32.totalorder (!%p1241_p8), %s1485_s29, 0 }
  0x55   : > { %1093 = dma.done.wait (%p1494_p3), %s306_s2, 128  }
  0x56   : > { %1095 = vsyncadd (%p1494_p3), %s306_s2, 4294967168  ;;  %p1495_p10 = scmp.eq.s32.totalorder %s1220_s27, 0 }
  0x58   : > { %1097 = dma.done.wait (%p1495_p10), [#allocation6], 640   ;;  %p1496_p8 = pmov %p1495_p10 }
  0x5a   : > { %1099 = vsyncadd (%p1496_p8), [#allocation6], 4294966656  ;;  %p1497_p7 = pmov %p1496_p8 }
  0x5c   : > { %1101 = dma.done.wait (%p1497_p7), [#allocation9], 128   ;;  %p1498_p11 = pmov %p1497_p7 }
  0x5d   : > { %v1142_v0 = vmov 0.0   ;;  %vm1143_vm0 = vmmov 0   ;;  %v364_v1 = vld [vmem:[#allocation5 + $0x18] sm:$0xff]  ;;  %v363_v2 = vld [vmem:[#allocation5 + $0x10] sm:$0xff]  ;;  %v1336_v3 = vld [vmem:[#allocation7] sm:$0xff]  ;;  %s1144_s1 = smov 32  }
  0x5e   : > { %1103 = vsyncadd (%p1498_p11), [#allocation9], 4294967168  ;;  %759 = vmatprep.subr.mxu0 %v1142_v0  ;;  %767 = vmatprep.mubr.msk.f32.mxu0 %vm1143_vm0, %v1142_v0  ;;  %v362_v4 = vld [vmem:[#allocation5 + $0x8] sm:$0xff]  ;;  %v361_v5 = vld [vmem:[#allocation5] sm:$0xff]  ;;  %vm365_vm1 = vcmask 261120   ;;  %s1145_s28 = smov 92  }
  0x5f   : > { %760 = vmatpush3.msra.mxu0 %v364_v1  ;;  %467 = vrot.lane.b32.xlu1 %v1336_v3, %s1144_s1  ;;  %v360_v6 = vld [vmem:[%s309_s8] sm:$0xff]  ;;  %s1146_s29 = smov 100   ;;  %s1147_s7 = smov 124   ;;  %vm449_vm2 = vcmask 31744   ;;  %vm451_vm3 = vcmask 64512   ;;  %vm453_vm4 = vcmask 97280  }
  0x60   : > { %761 = vmatprep.subr.mxu0 %v1142_v0  ;;  %vm455_vm5 = vcmask 130048   ;;  %vm457_vm6 = vcmask 162816   ;;  %vm459_vm7 = vcmask 195584   ;;  %vm461_vm8 = vcmask 228352   ;;  %v440_v16 = vld [vmem:[#allocation8] sm:$0xff]  ;;  %s1148_s11 = smov 4  }
  0x61   : > { %762 = vmatpush3.msra.mxu0 %v363_v2  ;;  %s1149_s9 = smov 64   ;;  %s1150_s13 = smov 96  }
  0x62   : > { %763 = vmatprep.subr.mxu0 %v1142_v0  ;;  %s359_s15 = scalar_lea.vmem [#allocation13], %s1320_s14  ;;  %s1361_s18 = sshll.u32 %s1126_s24, 7 }
  0x63   : > { %764 = vmatpush3.msra.mxu0 %v362_v4  ;;  %s345_s12 = scalar_lea.vmem [#allocation10], %s1320_s14  ;;  %s1151_s24 = smov [#allocation10]  }
  0x64   : > { %765 = vmatprep.subr.mxu0 %v1142_v0  ;;  %s524_s19 = sshll.u32 %s345_s12, 4  ;;  %s525_s19 = int_to_ptr.vmem [resolvable:$true] %s524_s19 }
  0x65   : > { %766 = vmatpush3.msra.mxu0 %v361_v5 }
  0x66   : > { %768 = vmatmul.mubr.msk.f32.vlgmr.msra.gmra.mxu0 %vm365_vm1, %v360_v6 }
  0xd1   : > { %v468_v20 = vpop.permute.xlu1 %467 }
 0x126   : > { %v435_v7 = vpop.f32.mrf.mxu0 }
 0x127   : > { %471 = vrot.lane.b32.xlu0 %v435_v7, %s1145_s28  ;;  %v470_v21 = vmul.f32 %v468_v20, %v435_v7  ;;  %v441_v34 = vmul.f32 %v1336_v3, %v435_v7  ;;  %s500_s28 = scalar_lea.sflag [#allocation4], %s1317_s17 }
 0x128   : > { %v769_v8 = vpop.f32.mrf.mxu0 }
 0x12b   : > { %474 = vrot.lane.b32.xlu0 %v435_v7, %s1146_s29  ;;  %s990_s29 = scalar_lea.vmem %s525_s19, 128 }
 0x12c   : > { %p991_p1 = scmp.ne.s32.totalorder %s525_s19, %s990_s29 }
 0x12e   : > { %p992_p9 = pnand %p991_p1, %p1287_p5 }
 0x12f   : > { %443 = vrot.lane.b32.xlu0 %v435_v7, %s1147_s7  ;;  %s994_s7 = sshll.u32 %s1151_s24, 4  ;;  %s995_s7 = int_to_ptr.vmem [resolvable:$false] %s994_s7 }
 0x130   : > { %p993_p13 = pneg %p992_p9  ;;  %p997_p2 = scmp.lt.s32.totalorder %s525_s19, %s995_s7 }
 0x199   : > { %v472_v9 = vpop.permute.xlu0 %471 }
 0x19d   : > { %v475_v10 = vpop.permute.xlu0 %474 }
 0x19e   : > { %v477_v11 = vsel %vm449_vm2, %v472_v9, %v475_v10 }
 0x19f   : > { %v478_v12 = vsel %vm451_vm3, %v477_v11, %v472_v9 }
 0x1a0   : > { %v479_v13 = vsel %vm453_vm4, %v478_v12, %v475_v10 }
 0x1a1   : > { %v480_v14 = vsel %vm455_vm5, %v479_v13, %v472_v9  ;;  %v444_v24 = vpop.permute.xlu0 %443 }
 0x1a2   : > { %v481_v15 = vsel %vm457_vm6, %v480_v14, %v475_v10 }
 0x1a3   : > { %v482_v17 = vsel %vm459_vm7, %v481_v15, %v472_v9 }
 0x1a4   : > { %v483_v18 = vsel %vm461_vm8, %v482_v17, %v475_v10 }
 0x1a5   : > { %v484_v19 = vmul.f32 %v483_v18, %v440_v16 }
 0x1a7   : > { %486 = vrot.lane.b32.xlu1 %v484_v19, %s1144_s1  ;;  %s522_s1 = scalar_lea.hbm %s1477_s4, %s1361_s18 }
 0x1ab   : > { %446 = vrot.lane.b32.xlu1 %v435_v7, %s1148_s11  ;;  %s996_s11 = scalar_lea.vmem %s995_s7, 256 }
 0x1ac   : > { %p998_p4 = scmp.lt.s32.totalorder %s996_s11, %s990_s29 }
 0x1ae   : > { %p999_p6 = por %p998_p4, %p997_p2 }
 0x1af   : > { %495 = vrot.lane.b32.xlu1 %v435_v7, %s1149_s9 }
 0x1b0   : > { %p1000_p12 = pnand %p999_p6, %p993_p13 }
 0x219   : > { %v487_v22 = vpop.permute.xlu1 %486 }
 0x21a   : > { %v489_v23 = vadd.f32 %v487_v22, %v470_v21 }
 0x21c   : > { %491 = vrot.lane.b32.xlu0 %v489_v23, %s1150_s13 }
 0x21d   : > { %v447_v25 = vpop.permute.xlu1 %446 }
 0x21e   : > { %v450_v26 = vsel %vm449_vm2, %v444_v24, %v447_v25 }
 0x21f   : > { %v452_v27 = vsel %vm451_vm3, %v450_v26, %v444_v24 }
 0x220   : > { %v454_v28 = vsel %vm453_vm4, %v452_v27, %v447_v25 }
 0x221   : > { %v456_v29 = vsel %vm455_vm5, %v454_v28, %v444_v24  ;;  %v496_v30 = vpop.permute.xlu1 %495 }
 0x222   : > { %v458_v31 = vsel %vm457_vm6, %v456_v29, %v447_v25  ;;  %498 = vst.msk [vmem:[%s359_s15] sm:$0xff] %vm365_vm1, %v496_v30 }
 0x223   : > { %v460_v32 = vsel %vm459_vm7, %v458_v31, %v444_v24 }
 0x224   : > { %v462_v33 = vsel %vm461_vm8, %v460_v32, %v447_v25 }
 0x225   : > { %v463_v35 = vmul.f32 %v462_v33, %v440_v16 }
 0x227   : > { %v464_v36 = vadd.f32 %v463_v35, %v441_v34 }
 0x229   : > { %465 = vst.msk [vmem:[%s345_s12] sm:$0xff] %vm365_vm1, %v464_v36 }
 0x22a   : > { %1003 = shalt.err (!%p1000_p12)
}
 0x22b   : > { %s1004_s9 = scalar_lea.hbm %s522_s1, 128  ;;  %s1008_s12 = scalar_lea.hbm %s1477_s4, 256 }
 0x22c   : > { %p1005_p0 = scmp.ne.s32.totalorder %s522_s1, %s1004_s9  ;;  %p1009_p8 = scmp.lt.s32.totalorder %s522_s1, %s1477_s4 }
 0x22d   : > { %p1010_p7 = scmp.lt.s32.totalorder %s1008_s12, %s1004_s9 }
 0x22e   : > { %p1006_p3 = pnand %p1005_p0, %p1287_p5 }
 0x22f   : > { %p1011_p11 = por %p1010_p7, %p1009_p8 }
 0x230   : > { %p1007_p10 = pneg %p1006_p3 }
 0x232   : > { %p1012_p1 = pnand %p1011_p11, %p1007_p10 }
 0x234   : > { %1015 = shalt.err (!%p1012_p1)
}
 0x235   : > { %784 = dma.vmem_to_hbm [thread:$0]  (%p1287_p5), %s525_s19, 128, %s522_s1, %s500_s28  }
 0x236   : > { %s504_s29 = sand.u32 1, %s1220_s27   ;;  %s352_s24 = scalar_lea.vmem [#allocation11], %s1320_s14 }
 0x237   : > { %s538_s7 = sshll.u32 %s352_s24, 4  ;;  %s552_s11 = sshll.u32 %s359_s15, 4  ;;  %s1393_s7 = int_to_ptr.vmem [resolvable:$true] %s538_s7  ;;  %s1401_s11 = int_to_ptr.vmem [resolvable:$true] %s552_s11 }
 0x238   : > { %s1391_s9 = scalar_lea.hbm %s1478_s5, %s1361_s18  ;;  %s1399_s19 = scalar_lea.hbm %s1479_s6, %s1361_s18 }
 0x239   : > { %s1404_s27 = scalar_lea.sflag [#allocation12], %s504_s29  ;;  %s1016_s14 = scalar_lea.vmem %s1393_s7, 128 }
 0x23a   : > { %p1017_p9 = scmp.ne.s32.totalorder %s1393_s7, %s1016_s14  ;;  %s1152_s15 = smov [#allocation11]  }
 0x23b   : > { %s1020_s1 = sshll.u32 %s1152_s15, 4  ;;  %s1021_s1 = int_to_ptr.vmem [resolvable:$false] %s1020_s1 }
 0x23c   : > { %p1018_p13 = pnand %p1017_p9, %p1287_p5  ;;  %s1022_s28 = scalar_lea.vmem %s1021_s1, 256 }
 0x23d   : > { %p1023_p4 = scmp.lt.s32.totalorder %s1393_s7, %s1021_s1  ;;  %p1024_p6 = scmp.lt.s32.totalorder %s1022_s28, %s1016_s14 }
 0x23e   : > { %p1019_p2 = pneg %p1018_p13 }
 0x23f   : > { %p1025_p12 = por %p1024_p6, %p1023_p4 }
 0x241   : > { %p1026_p0 = pnand %p1025_p12, %p1019_p2 }
 0x28e   : > { %v492_v37 = vpop.permute.xlu0 %491 }
 0x28f   : > { %494 = vst.msk [vmem:[%s352_s24] sm:$0xff] %vm365_vm1, %v492_v37 }
 0x290   : > { %1029 = shalt.err (!%p1026_p0)
}
 0x291   : > { %s1030_s18 = scalar_lea.hbm %s1391_s9, 128  ;;  %s1034_s24 = scalar_lea.hbm %s1478_s5, 256 }
 0x292   : > { %p1031_p3 = scmp.ne.s32.totalorder %s1391_s9, %s1030_s18  ;;  %p1035_p7 = scmp.lt.s32.totalorder %s1391_s9, %s1478_s5 }
 0x293   : > { %p1036_p11 = scmp.lt.s32.totalorder %s1034_s24, %s1030_s18 }
 0x294   : > { %p1032_p10 = pnand %p1031_p3, %p1287_p5 }
 0x295   : > { %p1037_p1 = por %p1036_p11, %p1035_p7 }
 0x296   : > { %p1033_p8 = pneg %p1032_p10 }
 0x298   : > { %p1038_p9 = pnand %p1037_p1, %p1033_p8 }
 0x29a   : > { %1041 = shalt.err (!%p1038_p9)
}
 0x29b   : > { %785 = dma.vmem_to_hbm [thread:$0]  (%p1287_p5), %s1393_s7, 128, %s1391_s9, %s1404_s27  }
 0x29c   : > { %s1042_s12 = scalar_lea.vmem %s1401_s11, 128  ;;  %s1153_s2 = smov [#allocation13]  }
 0x29d   : > { %p1043_p13 = scmp.ne.s32.totalorder %s1401_s11, %s1042_s12  ;;  %s1046_s14 = sshll.u32 %s1153_s2, 4  ;;  %s1047_s14 = int_to_ptr.vmem [resolvable:$false] %s1046_s14 }
 0x29e   : > { %s1048_s15 = scalar_lea.vmem %s1047_s14, 256  ;;  %p1049_p6 = scmp.lt.s32.totalorder %s1401_s11, %s1047_s14 }
 0x29f   : > { %p1044_p2 = pnand %p1043_p13, %p1287_p5  ;;  %p1050_p12 = scmp.lt.s32.totalorder %s1048_s15, %s1042_s12 }
 0x2a1   : > { %p1045_p4 = pneg %p1044_p2  ;;  %p1051_p0 = por %p1050_p12, %p1049_p6 }
 0x2a3   : > { %p1052_p3 = pnand %p1051_p0, %p1045_p4 }
 0x2a5   : > { %1055 = shalt.err (!%p1052_p3)
}
 0x2a6   : > { %s1056_s1 = scalar_lea.hbm %s1399_s19, 128  ;;  %s1060_s28 = scalar_lea.hbm %s1479_s6, 256 }
 0x2a7   : > { %p1057_p10 = scmp.ne.s32.totalorder %s1399_s19, %s1056_s1  ;;  %p1061_p11 = scmp.lt.s32.totalorder %s1399_s19, %s1479_s6 }
 0x2a8   : > { %p1062_p1 = scmp.lt.s32.totalorder %s1060_s28, %s1056_s1 }
 0x2a9   : > { %p1058_p8 = pnand %p1057_p10, %p1287_p5 }
 0x2aa   : > { %p1063_p9 = por %p1062_p1, %p1061_p11 }
 0x2ab   : > { %p1059_p7 = pneg %p1058_p8 }
 0x2ad   : > { %p1064_p13 = pnand %p1063_p9, %p1059_p7 }
 0x2af   : > { %1067 = shalt.err (!%p1064_p13)
}
 0x2b0   : > { %786 = dma.vmem_to_hbm [thread:$0]  (%p1287_p5), %s1401_s11, 128, %s1399_s19, %s1404_s27  }
 0x2b1 PF: > { %s564_s29 = sand.u32 1, %s1114_s21   ;;  %p1499_p2 = scmp.ne.s32.totalorder %s1486_s30, 0 }
 0x2b2   : > { %p1500_p4 = scmp.ge.s32.totalorder %s1134_s26, 2  ;;  %s565_s24 = scalar_lea.sflag [#allocation4], %s564_s29 }
 0x2b4   : > { %p805_p6 = pnand %p1500_p4, %p1499_p2 }
 0x2b6   : > { %p806_p12 = pneg %p805_p6 }
 0x2b8   : > { %1105 = dma.done.wait (%p806_p12), %s565_s24, 128  }
 0x2b9   : > { %1107 = vsyncadd (%p806_p12), %s565_s24, 4294967168  ;;  %s1501_s17 = sadd.s32 4294967294, %s1134_s26  }
 0x2ba   : > { %s573_s13 = sand.u32 1, %s1501_s17  }
 0x2bb   : > { %s574_s10 = scalar_lea.sflag [#allocation12], %s573_s13 }
 0x2bc   : > { %1109 = dma.done.wait (%p806_p12), %s574_s10, 256  }
 0x2bd   : > { %1111 = vsyncadd (%p806_p12), %s574_s10, 4294967040  ;;  %s28_s26 = sadd.s32 1, %s1134_s26   ;;  %s1502_s21 = smov %s1118_s22 }
 0x2be   : > { %p25_p5 = scmp.ge.s32.totalorder %s28_s26, 4   ;;  %s1503_s22 = smov %s1122_s23 }
 0x2bf   : > { %s1504_s23 = smov %s1299_s20  ;;  %s1505_s24 = smov %s1130_s25 }
 0x2c0   : > { %s1506_s25 = smov %s1508_s16  ;;  %27 = sbr.rel (!%p25_p5) target bundleno = 13 (0xd), region = 127 }
 0x2c5   :  { %588 = vsyncpa [#allocation3], 1 }
 0x2c6   :  { %590 = vsyncpa [#allocation3 + $0x1], 1 }
 0x2c7   :  { %591 = vsyncpa [#allocation6], 1 }
 0x2c8   :  { %592 = vsyncpa [#allocation9], 1 }
 0x2c9   :  { %593 = vsyncpa [#allocation4], 1 }
 0x2ca   :  { %595 = vsyncpa [#allocation4 + $0x1], 1 }
 0x2cb   :  { %596 = vsyncpa [#allocation12], 1 }
 0x2cc   :  { %598 = vsyncpa [#allocation12 + $0x1], 1 }

</bundles_post_ra>
